<compile_context>
chip_gen: v6e
topology: v6e:2x2x1
jax: 0.10.0
libtpu: 0.0.40
codegen_flags: <defaults>
</compile_context>

<pallas_src>
import jax
import jax.numpy as jnp
from jax.experimental import pallas as pl
from jax.experimental.pallas import tpu as pltpu


def _round_up(x, m):
    return (x + m - 1) // m * m


def _embed_kernel(x_ref, w_ref, mask_ref, maskemb_ref, pos_ref, o_ref):
    # x_ref:       (1, TN, Kp)  bf16 patchified pixels (this batch, this N-tile)
    # w_ref:       (Kp, Dp)     bf16 conv weight as matmul weight (resident)
    # mask_ref:    (1, TN, 1)   f32  per-patch mask
    # maskemb_ref: (1, Dp)      f32  learned mask embedding (resident)
    # pos_ref:     (TN, Dp)     f32  position-embedding rows for this tile
    # o_ref:       (1, TN, Dp)  f32  output tile
    pe = jnp.dot(x_ref[0], w_ref[...],
                 preferred_element_type=jnp.float32)            # (TN, Dp) on MXU
    m = mask_ref[0]                                             # (TN, 1)
    blended = pe + m * (maskemb_ref[...] - pe)                  # == pe*(1-m)+me*m
    o_ref[0] = (blended + pos_ref[...]).astype(o_ref.dtype)


def image_embeddings_with_mask(pixel_values, mask, conv_weight, pos_emb,
                               mask_emb, patch_size, *, tile_n=256):
    """
    pixel_values: (B, 3, H, W) float32   (NCHW, as in PyTorch)
    mask:         (B, N)                 (any dtype; cast to float32)
    conv_weight:  (D, 3, p, p) float32   (Conv2d weight, bias=False)
    pos_emb:      (N, D) float32         (nn.Embedding weight; ids = arange(N))
    mask_emb:     (1, 1, D) float32
    returns:      (B, N, D) float32
    """
    B, C, H, W = pixel_values.shape
    p = patch_size
    D = conv_weight.shape[0]
    nH, nW = H // p, W // p
    N = nH * nW
    K = C * p * p

    # im2col patchify (channel-major, matches the Conv2d weight reshape below).
    # TODO(synk): avoid the (B,N,K) HBM round-trip by fusing this producer into
    # the pallas input DMA (allow_input_fusion) or doing per-tile im2col in-kernel.
    patches = pixel_values.reshape(B, C, nH, p, nW, p)
    patches = patches.transpose(0, 2, 4, 1, 3, 5).reshape(B, N, K)     # (B, N, K)

    w = conv_weight.reshape(D, K).T                                    # (K, D)

    # Lane-align the contraction (K) and feature (D) dims; tile / pad N.
    Kp = _round_up(K, 128)
    Dp = _round_up(D, 128)
    if N <= tile_n:
        TN = _round_up(N, 8)
        Np = TN
    else:
        TN = tile_n
        Np = _round_up(N, TN)
    n_tiles = Np // TN

    patches = jnp.pad(patches, ((0, 0), (0, Np - N), (0, Kp - K))
                      ).astype(jnp.bfloat16)                           # (B, Np, Kp)
    w = jnp.pad(w, ((0, Kp - K), (0, Dp - D))).astype(jnp.bfloat16)    # (Kp, Dp)
    mask_f = jnp.pad(mask.astype(jnp.float32),
                     ((0, 0), (0, Np - N))).reshape(B, Np, 1)          # (B, Np, 1)
    pos = jnp.pad(pos_emb.astype(jnp.float32),
                  ((0, Np - N), (0, Dp - D)))                          # (Np, Dp)
    mask_e = jnp.pad(mask_emb.reshape(1, D).astype(jnp.float32),
                     ((0, 0), (0, Dp - D)))                            # (1, Dp)

    # TODO(synk): for very large D (>= 2048) on v7x (64 MiB VMEM) add a D-tile
    # grid axis with the N axis inner so the weight tile stays resident.

    flops = 2 * B * Np * Kp * Dp
    bytes_accessed = (patches.size * 2 + w.size * 2 + mask_f.size * 4
                      + mask_e.size * 4 + pos.size * 4 + B * Np * Dp * 4)

    out = pl.pallas_call(
        _embed_kernel,
        out_shape=jax.ShapeDtypeStruct((B, Np, Dp), jnp.float32),
        grid_spec=pltpu.PrefetchScalarGridSpec(
            num_scalar_prefetch=0,
            grid=(B, n_tiles),
            in_specs=[
                pl.BlockSpec((1, TN, Kp), lambda b, n: (b, n, 0)),  # patches
                pl.BlockSpec((Kp, Dp), lambda b, n: (0, 0)),        # weight (resident)
                pl.BlockSpec((1, TN, 1), lambda b, n: (b, n, 0)),   # mask
                pl.BlockSpec((1, Dp), lambda b, n: (0, 0)),         # mask emb (resident)
                pl.BlockSpec((TN, Dp), lambda b, n: (n, 0)),        # position emb
            ],
            out_specs=pl.BlockSpec((1, TN, Dp), lambda b, n: (b, n, 0)),
        ),
        compiler_params=pltpu.CompilerParams(
            dimension_semantics=("parallel", "parallel")),
        cost_estimate=pl.CostEstimate(flops=flops, transcendentals=0,
                                      bytes_accessed=bytes_accessed),
    )(patches, w, mask_f, mask_e, pos)

    return out[:, :N, :D]


def reference(pixel_values, mask, conv_weight, pos_emb, mask_emb, patch_size):
    """Pure-JAX f32 reference mirroring the PyTorch forward."""
    B, C, H, W = pixel_values.shape
    p = patch_size
    D = conv_weight.shape[0]
    nH, nW = H // p, W // p
    N = nH * nW
    patches = pixel_values.reshape(B, C, nH, p, nW, p)
    patches = patches.transpose(0, 2, 4, 1, 3, 5).reshape(B, N, C * p * p)
    pe = jnp.einsum("bnk,dk->bnd", patches, conv_weight.reshape(D, -1))
    m = mask.astype(jnp.float32)[..., None]
    pe = pe * (1.0 - m) + mask_emb * m
    return pe + pos_emb[None]


if __name__ == "__main__":
    # Small config: image_size=16, patch_size=4 -> N=16 patches, dim=32.
    image_size, patch_size, dim = 16, 4, 32
    B, C = 2, 3
    N = (image_size // patch_size) ** 2

    key = jax.random.PRNGKey(0)
    k1, k2, k3, k4, k5 = jax.random.split(key, 5)

    pixel_values = jax.random.normal(k1, (B, C, image_size, image_size), jnp.float32)
    mask = (jax.random.uniform(k2, (B, N)) > 0.5).astype(jnp.int32)

    # Deterministic synthetic parameters (shapes from the module's __init__).
    conv_weight = jax.random.normal(k3, (dim, C, patch_size, patch_size),
                                    jnp.float32) * 0.02
    pos_emb = jax.random.normal(k4, (N, dim), jnp.float32) * 0.02
    mask_emb = jax.random.normal(k5, (1, 1, dim), jnp.float32) * 0.02

    out = image_embeddings_with_mask(pixel_values, mask, conv_weight,
                                     pos_emb, mask_emb, patch_size)
    out = jax.block_until_ready(out)

    ref = reference(pixel_values, mask, conv_weight, pos_emb, mask_emb, patch_size)
    assert out.shape == (B, N, dim), out.shape
    # bf16 matmul operands (f32 accumulate) -> relaxed tolerance vs the f32 reference.
    assert jnp.allclose(out, ref, atol=2e-2, rtol=2e-2), "mismatch vs reference"
    print("KERNEL_OK")
</pallas_src>

<mosaic_0001>
module attributes {stable_mosaic.version = 11 : i64} {
  func.func @_embed_kernel(%arg0: i32, %arg1: i32, %arg2: memref<1x16x128xbf16, #tpu.memory_space<vmem>>, %arg3: memref<128x128xbf16, #tpu.memory_space<vmem>>, %arg4: memref<1x16x1xf32, #tpu.memory_space<vmem>>, %arg5: memref<1x128xf32, #tpu.memory_space<vmem>>, %arg6: memref<16x128xf32, #tpu.memory_space<vmem>>, %arg7: memref<1x16x128xf32, #tpu.memory_space<vmem>>) attributes {dimension_semantics = [#tpu.dimension_semantics<parallel>, #tpu.dimension_semantics<parallel>], iteration_bounds = array<i64: 2, 1>, scalar_prefetch = 0 : i64, scratch_operands = 0 : i64, tpu.core_type = #tpu.core_type<tc>, window_params = [{transform_indices = @transform_0, window_bounds = array<i64: 1, 16, 128>}, {pipeline_mode = #tpu.pipeline_mode<synchronous>, transform_indices = @transform_1, window_bounds = array<i64: 128, 128>}, {transform_indices = @transform_2, window_bounds = array<i64: 1, 16, 1>}, {pipeline_mode = #tpu.pipeline_mode<synchronous>, transform_indices = @transform_3, window_bounds = array<i64: 1, 128>}, {transform_indices = @transform_4, window_bounds = array<i64: 16, 128>}, {transform_indices = @transform_5, window_bounds = array<i64: 1, 16, 128>}]} {
    %c0 = arith.constant 0 : index
    %c0_0 = arith.constant 0 : index
    %c0_1 = arith.constant 0 : index
    %0 = vector.load %arg2[%c0, %c0_0, %c0_1] : memref<1x16x128xbf16, #tpu.memory_space<vmem>>, vector<1x16x128xbf16>
    %1 = vector.shape_cast %0 : vector<1x16x128xbf16> to vector<16x128xbf16>
    %c0_2 = arith.constant 0 : index
    %c0_3 = arith.constant 0 : index
    %2 = vector.load %arg3[%c0_2, %c0_3] : memref<128x128xbf16, #tpu.memory_space<vmem>>, vector<128x128xbf16>
    %cst = arith.constant dense<0.000000e+00> : vector<16x128xf32>
    %3 = tpu.matmul %1, %2, %cst {dimension_numbers = #tpu.dot_dimension_numbers<[1], [0], [0], [1], [0, 0, 1, 1], [], []>} : vector<16x128xbf16>, vector<128x128xbf16>, vector<16x128xf32> -> vector<16x128xf32>
    %c0_4 = arith.constant 0 : index
    %c0_5 = arith.constant 0 : index
    %c0_6 = arith.constant 0 : index
    %4 = vector.load %arg4[%c0_4, %c0_5, %c0_6] : memref<1x16x1xf32, #tpu.memory_space<vmem>>, vector<1x16x1xf32>
    %5 = vector.shape_cast %4 : vector<1x16x1xf32> to vector<16x1xf32>
    %c0_7 = arith.constant 0 : index
    %c0_8 = arith.constant 0 : index
    %6 = vector.load %arg5[%c0_7, %c0_8] : memref<1x128xf32, #tpu.memory_space<vmem>>, vector<1x128xf32>
    %7 = vector.broadcast %6 : vector<1x128xf32> to vector<16x128xf32>
    %8 = arith.subf %7, %3 : vector<16x128xf32>
    %9 = vector.broadcast %5 : vector<16x1xf32> to vector<16x128xf32>
    %10 = arith.mulf %9, %8 : vector<16x128xf32>
    %11 = arith.addf %3, %10 : vector<16x128xf32>
    %c0_9 = arith.constant 0 : index
    %c0_10 = arith.constant 0 : index
    %12 = vector.load %arg6[%c0_9, %c0_10] : memref<16x128xf32, #tpu.memory_space<vmem>>, vector<16x128xf32>
    %13 = arith.addf %11, %12 : vector<16x128xf32>
    %c0_11 = arith.constant 0 : index
    %c0_12 = arith.constant 0 : index
    %c0_13 = arith.constant 0 : index
    %14 = vector.load %arg7[%c0_11, %c0_12, %c0_13] : memref<1x16x128xf32, #tpu.memory_space<vmem>>, vector<1x16x128xf32>
    %15 = vector.shape_cast %14 : vector<1x16x128xf32> to vector<16x128xf32>
    %16 = vector.shape_cast %13 : vector<16x128xf32> to vector<1x16x128xf32>
    tpu.vector_store %arg7[%c0_11, %c0_12, %c0_13], %16 {strides = array<i32>} : memref<1x16x128xf32, #tpu.memory_space<vmem>>, vector<1x16x128xf32>,
    return
  }
  func.func @transform_0(%arg0: i32, %arg1: i32) -> (i32, i32, i32) {
    %c0_i32 = arith.constant 0 : i32
    %c0_i32_0 = arith.constant 0 : i32
    return %arg0, %arg1, %c0_i32 : i32, i32, i32
  }
  func.func @transform_1(%arg0: i32, %arg1: i32) -> (i32, i32) {
    %c0_i32 = arith.constant 0 : i32
    %c0_i32_0 = arith.constant 0 : i32
    %c0_i32_1 = arith.constant 0 : i32
    return %c0_i32, %c0_i32_0 : i32, i32
  }
  func.func @transform_2(%arg0: i32, %arg1: i32) -> (i32, i32, i32) {
    %c0_i32 = arith.constant 0 : i32
    %c0_i32_0 = arith.constant 0 : i32
    return %arg0, %arg1, %c0_i32 : i32, i32, i32
  }
  func.func @transform_3(%arg0: i32, %arg1: i32) -> (i32, i32) {
    %c0_i32 = arith.constant 0 : i32
    %c0_i32_0 = arith.constant 0 : i32
    %c0_i32_1 = arith.constant 0 : i32
    return %c0_i32, %c0_i32_0 : i32, i32
  }
  func.func @transform_4(%arg0: i32, %arg1: i32) -> (i32, i32) {
    %c0_i32 = arith.constant 0 : i32
    %c0_i32_0 = arith.constant 0 : i32
    return %arg1, %c0_i32 : i32, i32
  }
  func.func @transform_5(%arg0: i32, %arg1: i32) -> (i32, i32, i32) {
    %c0_i32 = arith.constant 0 : i32
    %c0_i32_0 = arith.constant 0 : i32
    return %arg0, %arg1, %c0_i32 : i32, i32, i32
  }
}

</mosaic_0001>

<bundles_post_ra>
// kernel: tpu_custom_call.1
= control target key start
LH: loop header
LB: loop body
LE: loop exit
PB: predicated region body
PF: predicated region fallthrough
CT: control target
= control target key end

     0   :  { %10 = vsyncpa [#allocation3], 0  ;;  %s1049_s0 = inlined_call_operand.vmem [shape: bf16[2,16,128], index: 0, kind: input, shape index: {}]   ;;  %s1050_s1 = inlined_call_operand.hbm [shape: bf16[128,128], index: 1, kind: input, shape index: {}]   ;;  %s1051_s2 = inlined_call_operand.vmem [shape: f32[2,16,1], index: 2, kind: input, shape index: {}]   ;;  %s1052_s3 = inlined_call_operand.vmem [shape: f32[1,128], index: 3, kind: input, shape index: {}]   ;;  %s1053_s4 = inlined_call_operand.vmem [shape: f32[16,128], index: 4, kind: input, shape index: {}]   ;;  %s1054_s5 = inlined_call_operand.hbm [shape: f32[2,16,128], index: 5, kind: output, shape index: {}]  }
   0x1   :  { %11 = vsyncpa [#allocation4], 0 }
   0x2   :  { %13 = vsyncpa [#allocation4 + $0x1], 0  ;;  %s902_s18 = smov 0   ;;  %s904_s19 = smov 0  }
   0x3   :  { %s906_s20 = smov 0   ;;  %s908_s21 = smov 0  }
   0x4   :  { %s910_s22 = smov 0   ;;  %s912_s23 = smov 0  }
   0x5 LB: > { %s612_s24 = sadd.s32 4294967295, %s861_s23   ;;  %s613_s25 = sadd.s32 4294967294, %s861_s23   ;;  %s861_s23 = sphi %s912_s23, %s19_s23   ;;  %s857_s22 = sphi %s910_s22, %s1063_s22   ;;  %s853_s21 = sphi %s908_s21, %s1062_s21   ;;  %s849_s20 = sphi %s906_s20, %s1061_s20   ;;  %s845_s19 = sphi %s904_s19, %s1060_s19   ;;  %s841_s18 = sphi %s902_s18, %s1059_s18  }
   0x6   : > { %s31_s26 = sadd.s32 1, %s857_s22  ;;  %s164_s27 = sadd.s32 1, %s849_s20 }
   0x7   : > { %p33_p0 = scmp.ge.s32.totalorder %s31_s26, 2  ;;  %p174_p1 = scmp.ne.s32.totalorder %s849_s20, %s845_s19 }
   0x8   : > { %p175_p2 = scmp.eq.s32.totalorder %s612_s24, 1  ;;  %p180_p3 = scmp.ne.s32.totalorder %s845_s19, %s841_s18 }
   0x9   : > { %s1065_s26 = smov (%p33_p0, %s31_s26), 0  ;;  %p181_p5 = scmp.eq.s32.totalorder %s613_s25, 1 }
   0xa   : > { %p942_p4 = por %p175_p2, %p174_p1  ;;  %s159_s29 = ssub.s32 %s857_s22, %s1065_s26 }
   0xb   : > { %p614_p6 = scmp.ge.s32.totalorder %s861_s23, 1  ;;  %p162_p7 = scmp.eq.s32.totalorder %s159_s29, 0 }
   0xc   : > { %p949_p8 = por %p181_p5, %p180_p3  ;;  %p188_p9 = scmp.lt.s32.totalorder %s861_s23, 3 }
   0xd   : > { %s955_s6 = scalar_select %p162_p7, %s849_s20, %s164_s27  }
   0xe   : > { %p957_p10 = pnand %p614_p6, %p188_p9  ;;  %p961_p11 = scmp.eq.s32.totalorder %s612_s24, 0 }
   0xf   : > { %s863_s9 = smov [#allocation2]  }
  0x10   : > { %p678_p12 = pneg %p957_p10  ;;  %s200_s10 = sshll.u32 %s863_s9, 4  ;;  %s201_s10 = int_to_ptr.vmem [resolvable:$true] %s200_s10 }
  0x11   : > { %s766_s11 = scalar_lea.vmem %s201_s10, 1024  ;;  %p774_p5 = scmp.lt.s32.totalorder %s201_s10, %s201_s10 }
  0x12   : > { %p679_p13 = pnand %p961_p11, %p678_p12  ;;  %p767_p1 = scmp.ne.s32.totalorder %s201_s10, %s766_s11 }
  0x13   : > { %p775_p6 = scmp.lt.s32.totalorder %s766_s11, %s766_s11 }
  0x14   : > { %p757_p0 = pneg %p679_p13 }
  0x15   : > { %p776_p7 = por %p775_p6, %p774_p5 }
  0x16   : > { %p769_p2 = pnand %p767_p1, %p757_p0 }
  0x18   : > { %p770_p3 = pneg %p769_p2 }
  0x1a   : > { %p777_p9 = pnand %p776_p7, %p770_p3 }
  0x1c   : > { %780 = shalt.err (!%p777_p9)
}
  0x1d   : > { %s864_s12 = smov 64   ;;  %s865_s13 = smov 4  }
  0x1e   : > { %681 = dma.hbm_to_vmem [thread:$0]  (!%p679_p13), %s1050_s1, 1024, %s201_s10, [#allocation3], %s864_s12, %s864_s12, %s865_s13  }
  0x1f   : > { %254 = sbr.rel (%p957_p10) target bundleno = 289 (0x121), region = 40 }
  0x24   : > { %832 = dma.done.wait (%p961_p11), [#allocation3], 1024  }
  0x25   : > { %834 = vsyncadd (%p961_p11), [#allocation3], 4294966272  ;;  %v866_v0 = vmov 0.0   ;;  %vm867_vm0 = vmmov 0   ;;  %v868_v1 = vmov 0   ;;  %p301_p12 = scmp.lt.s32.totalorder %s853_s21, 1 }
  0x26   : > { %652 = vmatprep.subr.bf16.mxu0 %v866_v0  ;;  %668 = vmatprep.mubr.msk.bf16.mxu0 %vm867_vm0, %v866_v0  ;;  %v746_v2 = vld [vmem:[#allocation2 + $0x38] sm:$0xff]   ;;  %v747_v3 = vld [vmem:[#allocation2 + $0x30] sm:$0xff]   ;;  %v748_v4 = vld [vmem:[#allocation2 + $0x28] sm:$0xff]   ;;  %s297_s12 = sand.u32 1, %s845_s19   ;;  %s869_s10 = smov [#allocation5]  }
  0x27   : > { %745 = vset.pattern.permute.xlu0 %v868_v1  ;;  %s302_s16 = scalar_select %p301_p12, %s853_s21, 1  ;;  %653 = vmatpush3.bf16.msra.mxu0 %v746_v2  ;;  %v749_v6 = vld [vmem:[#allocation2 + $0x20] sm:$0xff]   ;;  %v750_v8 = vld [vmem:[#allocation2 + $0x18] sm:$0xff]   ;;  %v751_v9 = vld [vmem:[#allocation2 + $0x10] sm:$0xff]  }
  0x28   : > { %654 = vmatprep.subr.bf16.mxu0 %v866_v0  ;;  %v752_v10 = vld [vmem:[#allocation2 + $0x8] sm:$0xff]   ;;  %v753_v11 = vld [vmem:[#allocation2] sm:$0xff]   ;;  %s620_s13 = sshll.u32 %s297_s12, 4  ;;  %s785_s11 = sshll.u32 %s869_s10, 4  ;;  %s786_s11 = int_to_ptr.vmem [resolvable:$false] %s785_s11 }
  0x29   : > { %s641_s17 = sshll.u32 %s302_s16, 4  ;;  %s640_s24 = sshll.u32 %s302_s16, 3  ;;  %v634_v13 = vld [vmem:[%s1052_s3] ss:$0 sm:$0xff]  ;;  %v467_v27 = vld [vmem:[%s1053_s4 + $0x8] sm:$0xff] }
  0x2a   : > { %s318_s29 = scalar_lea.vmem %s1051_s2, %s641_s17  ;;  %s308_s9 = scalar_lea.vmem %s1049_s0, %s640_s24  ;;  %v466_v19 = vld [vmem:[%s1053_s4] sm:$0xff] }
  0x2b   : > { %655 = vmatpush3.bf16.msra.mxu0 %v747_v3  ;;  %v441_v5 = vld [vmem:[%s318_s29] sm:$0xff]  ;;  %v442_v7 = vld [vmem:[%s318_s29 + $0x8] sm:$0xff]  ;;  %s299_s16 = scalar_lea.vmem [#allocation5], %s620_s13  ;;  %s642_s24 = sshll.u32 %s853_s21, 8 }
  0x2c   : > { %656 = vmatprep.subr.bf16.mxu0 %v866_v0  ;;  %454 = vperm.xlu0 %745, %v441_v5   ;;  %v754_v12 = vld [vmem:[%s308_s9] sm:$0xff]   ;;  %s488_s17 = sshll.u32 %s299_s16, 4  ;;  %s1002_s8 = scalar_lea.hbm %s1054_s5, %s642_s24  ;;  %s997_s17 = int_to_ptr.vmem [resolvable:$true] %s488_s17 }
  0x2d   : > { %s1004_s9 = scalar_lea.sflag [#allocation4], %s297_s12  ;;  %s781_s21 = scalar_lea.vmem %s997_s17, 256 }
  0x2e   : > { %p782_p10 = scmp.ne.s32.totalorder %s997_s17, %s781_s21  ;;  %s787_s13 = scalar_lea.vmem %s786_s11, 512 }
  0x2f   : > { %657 = vmatpush3.bf16.msra.mxu0 %v748_v4  ;;  %p788_p0 = scmp.lt.s32.totalorder %s997_s17, %s786_s11  ;;  %p789_p1 = scmp.lt.s32.totalorder %s787_s13, %s781_s21 }
  0x30   : > { %658 = vmatprep.subr.bf16.mxu0 %v866_v0  ;;  %459 = vperm.xlu0 %745, %v442_v7   ;;  %p783_p11 = pnand %p782_p10, %p942_p4 }
  0x31   : > { %p790_p2 = por %p789_p1, %p788_p0 }
  0x32   : > { %p784_p13 = pneg %p783_p11 }
  0x33   : > { %659 = vmatpush3.bf16.msra.mxu0 %v749_v6 }
  0x34   : > { %660 = vmatprep.subr.bf16.mxu0 %v866_v0  ;;  %p791_p3 = pnand %p790_p2, %p784_p13 }
  0x37   : > { %661 = vmatpush3.bf16.msra.mxu0 %v750_v8 }
  0x38   : > { %662 = vmatprep.subr.bf16.mxu0 %v866_v0 }
  0x3b   : > { %663 = vmatpush3.bf16.msra.mxu0 %v751_v9 }
  0x3c   : > { %664 = vmatprep.subr.bf16.mxu0 %v866_v0 }
  0x3f   : > { %665 = vmatpush3.bf16.msra.mxu0 %v752_v10 }
  0x40   : > { %666 = vmatprep.subr.bf16.mxu0 %v866_v0 }
  0x43   : > { %667 = vmatpush3.bf16.msra.mxu0 %v753_v11 }
  0x46   : > { %669 = vmatmul.mubr.bf16.vlgmr.msra.gmra.mxu0 %v754_v12 }
  0xa7   : > { %v455_v14 = vpop.permute.xlu0 %454 }
  0xab   : > { %v460_v23 = vpop.permute.xlu0 %459 }
 0x106   : > { %v434_v15 = vpop.f32.mrf.mxu0 }
 0x107   : > { %v450_v16 = vsub.f32 %v634_v13, %v434_v15 }
 0x108   : > { %v670_v17 = vpop.f32.mrf.mxu0 }
 0x109   : > { %v462_v18 = vmul.f32 %v455_v14, %v450_v16 }
 0x10a   : > { %v437_v20 = vpop.f32.mrf.mxu0 }
 0x10b   : > { %v464_v21 = vadd.f32 %v462_v18, %v434_v15  ;;  %v451_v22 = vsub.f32 %v634_v13, %v437_v20 }
 0x10c   : > { %v671_v24 = vpop.f32.mrf.mxu0 }
 0x10d   : > { %v468_v25 = vadd.f32 %v466_v19, %v464_v21  ;;  %v463_v26 = vmul.f32 %v460_v23, %v451_v22 }
 0x10f   : > { %470 = vst [vmem:[%s299_s16] sm:$0xff] %v468_v25  ;;  %v465_v28 = vadd.f32 %v463_v26, %v437_v20 }
 0x111   : > { %v469_v29 = vadd.f32 %v467_v27, %v465_v28 }
 0x113   : > { %471 = vst [vmem:[%s299_s16 + $0x8] sm:$0xff] %v469_v29 }
 0x114   : > { %794 = shalt.err (!%p791_p3)
}
 0x115   : > { %s795_s12 = scalar_lea.hbm %s1002_s8, 256  ;;  %s799_s16 = scalar_lea.hbm %s1054_s5, 512 }
 0x116   : > { %p796_p5 = scmp.ne.s32.totalorder %s1002_s8, %s795_s12  ;;  %p800_p9 = scmp.lt.s32.totalorder %s1002_s8, %s1054_s5 }
 0x117   : > { %p801_p12 = scmp.lt.s32.totalorder %s799_s16, %s795_s12 }
 0x118   : > { %p797_p6 = pnand %p796_p5, %p942_p4 }
 0x119   : > { %p802_p10 = por %p801_p12, %p800_p9 }
 0x11a   : > { %p798_p7 = pneg %p797_p6 }
 0x11c   : > { %p803_p11 = pnand %p802_p10, %p798_p7 }
 0x11e   : > { %806 = shalt.err (!%p803_p11)
}
 0x11f   : > { %s870_s27 = smov 128   ;;  %s871_s29 = smov 8  }
 0x120   : > { %676 = dma.vmem_to_hbm [thread:$0]  (%p942_p4), %s997_s17, 256, %s1002_s8, %s1004_s9, %s870_s27, %s870_s27, %s871_s29  }
 0x121 PF: > { %p688_p13 = scmp.ge.s32.totalorder %s861_s23, 2  ;;  %s503_s7 = sand.u32 1, %s841_s18  }
 0x122   : > { %s504_s21 = scalar_lea.sflag [#allocation4], %s503_s7 }
 0x123   : > { %p683_p0 = pnand %p688_p13, %p949_p8 }
 0x125   : > { %p684_p1 = pneg %p683_p0 }
 0x127   : > { %836 = dma.done.wait (%p684_p1), %s504_s21, 256  }
 0x128   : > { %838 = vsyncadd (%p684_p1), %s504_s21, 4294967040  ;;  %s19_s23 = sadd.s32 1, %s861_s23   ;;  %s1059_s18 = smov %s845_s19 }
 0x129   : > { %p16_p2 = scmp.ge.s32.totalorder %s19_s23, 4   ;;  %s1060_s19 = smov %s849_s20 }
 0x12a   : > { %s1061_s20 = smov %s955_s6  ;;  %s1062_s21 = smov %s857_s22 }
 0x12b   : > { %s1063_s22 = smov %s1065_s26  ;;  %18 = sbr.rel (!%p16_p2) target bundleno = 5 (0x5), region = 86 }
 0x130   :  { %509 = vsyncpa [#allocation3], 1 }
 0x131   :  { %511 = vsyncpa [#allocation3 + $0x1], 1 }
 0x132   :  { %512 = vsyncpa [#allocation4], 1 }
 0x133   :  { %514 = vsyncpa [#allocation4 + $0x1], 1 }

</bundles_post_ra>
